<compile_context>
chip_gen: v5e
topology: v5e:2x2
jax: 0.10.0
libtpu: 0.0.40
codegen_flags: <defaults>
</compile_context>

<pallas_src>
import jax
import jax.numpy as jnp
from jax import lax
from jax.experimental import pallas as pl
from jax.experimental.pallas import tpu as pltpu


def _upconv_kernel(p_ref, w_ref, b_ref, o_ref):
    # p_ref: (1, Mblk, G*4*Cin)   bf16 im2col patches for one row-strip
    # w_ref: (G*4*Cin, G*4*Cout)  bf16 block-diagonal folded phase weights
    # b_ref: (1, G*4*Cout)        f32 bias (tiled per phase / column group)
    # o_ref: (1, Mblk, G*4*Cout)  outputs; lane dim >= 128 -> dense stores
    acc = jnp.dot(p_ref[0], w_ref[...], preferred_element_type=jnp.float32)
    o_ref[0] = (acc + b_ref[...]).astype(o_ref.dtype)


def up_convolution(x_nchw, weight, bias, *, stride=2, padding=0, output_padding=1):
    """ConvTranspose2d forward matching PyTorch semantics.

    x_nchw : (N, Cin, H, W)
    weight : (Cin, Cout, K, K)   (PyTorch ConvTranspose2d layout)
    bias   : (Cout,)
    returns: (N, Cout, 2H+2, 2W+2)
    """
    N, Cin, H, W = x_nchw.shape
    Cin_w, Cout, K, K2 = weight.shape
    assert Cin_w == Cin
    assert (K, K2, stride, padding, output_padding) == (3, 3, 2, 0, 1), (
        "specialized to the module's default ConvTranspose2d(3, s=2, p=0, op=1)")

    Ho, Wo = 2 * H + 2, 2 * W + 2
    Hp, Wp = H + 1, W + 1                 # per-parity (phase) output rows / cols

    # Column-group size: pack G phase-columns per matmul row so the output lane
    # dim G*4*Cout is >= 128 (and the contraction becomes G*4*Cin).
    G = -(-128 // (4 * Cout))
    ROWS = 16                             # phase rows per grid step (bf16 sublane mult.)
    Hp_pad = -(-Hp // ROWS) * ROWS
    Wp_pad = -(-Wp // G) * G
    TCin, TCout = G * 4 * Cin, G * 4 * Cout
    Mblk = ROWS * Wp_pad // G             # matmul rows per grid step
    Mtot = Hp_pad * Wp_pad // G

    # ---- XLA glue: NHWC, 1-halo pad, 2x2-tap im2col (no zero-stuffing) -------
    x_nhwc = jnp.transpose(x_nchw, (0, 2, 3, 1))                       # (N,H,W,Cin)
    xpad = jnp.pad(x_nhwc, ((0, 0), (1, Hp_pad - H), (1, Wp_pad - W), (0, 0)))
    taps = [xpad[:, dh:dh + Hp_pad, dw:dw + Wp_pad, :]
            for dh in (0, 1) for dw in (0, 1)]
    patches = jnp.concatenate(taps, axis=-1).astype(jnp.bfloat16)      # (N,Hp_pad,Wp_pad,4Cin)
    patches = patches.reshape(N, Mtot, TCin)                           # pure row-major regroup

    # ---- fold taps + 4 phases (+ G column groups) into one weight matrix -----
    # Phase (a,b) with tap shift (dh,dw) uses original kernel tap
    #   kh = a + 2*(1-dh), kw = b + 2*(1-dw)          (only when < K).
    w_fold = jnp.zeros((4 * Cin, 4 * Cout), jnp.float32)
    for dh in range(2):
        for dw in range(2):
            for a in range(2):
                for b in range(2):
                    kh, kw = a + 2 * (1 - dh), b + 2 * (1 - dw)
                    if kh < K and kw < K:
                        w_fold = w_fold.at[
                            (2 * dh + dw) * Cin:(2 * dh + dw + 1) * Cin,
                            (2 * a + b) * Cout:(2 * a + b + 1) * Cout,
                        ].set(weight[:, :, kh, kw].astype(jnp.float32))
    w_big = jnp.zeros((TCin, TCout), jnp.float32)
    for g in range(G):                      # block-diagonal over column groups
        w_big = w_big.at[g * 4 * Cin:(g + 1) * 4 * Cin,
                         g * 4 * Cout:(g + 1) * 4 * Cout].set(w_fold)
    w_big = w_big.astype(jnp.bfloat16)
    b_big = jnp.tile(bias.astype(jnp.float32), 4 * G).reshape(1, TCout)

    # ---- Pallas call: grid over (batch, phase-row strips), both parallel -----
    out_flat = pl.pallas_call(
        _upconv_kernel,
        out_shape=jax.ShapeDtypeStruct((N, Mtot, TCout), x_nchw.dtype),
        grid_spec=pltpu.PrefetchScalarGridSpec(
            num_scalar_prefetch=0,
            grid=(N, Hp_pad // ROWS),
            in_specs=[
                pl.BlockSpec((1, Mblk, TCin), lambda n, s: (n, s, 0)),
                pl.BlockSpec((TCin, TCout), lambda n, s: (0, 0)),
                pl.BlockSpec((1, TCout), lambda n, s: (0, 0)),
            ],
            out_specs=pl.BlockSpec((1, Mblk, TCout), lambda n, s: (n, s, 0)),
        ),
        compiler_params=pltpu.CompilerParams(
            dimension_semantics=("parallel", "parallel"),
            vmem_limit_bytes=32 * 1024 * 1024,   # explicit; safe on v7x's 64 MiB VMEM
        ),
    )(patches, w_big, b_big)

    # ---- un-flatten (n, r, c, a, b, co) -> NCHW: metadata + one transpose -----
    out = out_flat.reshape(N, Hp_pad, Wp_pad, 2, 2, Cout)[:, :Hp, :Wp]
    out = jnp.transpose(out, (0, 5, 1, 3, 2, 4)).reshape(N, Cout, Ho, Wo)
    return out


def _reference(x_nchw, weight, bias, *, stride=2, padding=0, output_padding=1):
    # Pure-JAX f32 reference via lhs-dilated convolution (== ConvTranspose2d).
    K = weight.shape[2]
    wf = jnp.transpose(weight[:, :, ::-1, ::-1], (1, 0, 2, 3))  # (Cout, Cin, K, K)
    pad_lo = K - 1 - padding
    pad_hi = K - 1 - padding + output_padding
    out = lax.conv_general_dilated(
        x_nchw, wf,
        window_strides=(1, 1),
        padding=[(pad_lo, pad_hi), (pad_lo, pad_hi)],
        lhs_dilation=(stride, stride),
        dimension_numbers=("NCHW", "OIHW", "NCHW"),
    )
    return out + bias.reshape(1, -1, 1, 1)


if __name__ == "__main__":
    key = jax.random.PRNGKey(0)
    kx, kw, kb = jax.random.split(key, 3)

    N, Cin, Cout, H, W, K = 2, 4, 8, 16, 16, 3
    x = jax.random.normal(kx, (N, Cin, H, W), jnp.float32)
    bound = 1.0 / (Cin * K * K) ** 0.5
    weight = jax.random.uniform(kw, (Cin, Cout, K, K), jnp.float32, -bound, bound)
    bias = jax.random.uniform(kb, (Cout,), jnp.float32, -bound, bound)

    out = up_convolution(x, weight, bias)
    out = jax.block_until_ready(out)

    ref = jax.block_until_ready(_reference(x, weight, bias))
    assert out.shape == (N, Cout, 2 * H + 2, 2 * W + 2), out.shape
    # bf16 MXU operands with f32 accumulation -> slightly looser tolerance.
    assert jnp.allclose(out, ref, rtol=2e-2, atol=2e-2), (
        float(jnp.max(jnp.abs(out - ref)))
    )
    print("KERNEL_OK")
</pallas_src>

<mosaic_0001>
module attributes {stable_mosaic.version = 11 : i64} {
  func.func @_upconv_kernel(%arg0: i32, %arg1: i32, %arg2: memref<1x80x64xbf16, #tpu.memory_space<vmem>>, %arg3: memref<64x128xbf16, #tpu.memory_space<vmem>>, %arg4: memref<1x128xf32, #tpu.memory_space<vmem>>, %arg5: memref<1x80x128xf32, #tpu.memory_space<vmem>>) attributes {dimension_semantics = [#tpu.dimension_semantics<parallel>, #tpu.dimension_semantics<parallel>], iteration_bounds = array<i64: 2, 2>, scalar_prefetch = 0 : i64, scratch_operands = 0 : i64, tpu.core_type = #tpu.core_type<tc>, window_params = [{transform_indices = @transform_0, window_bounds = array<i64: 1, 80, 64>}, {pipeline_mode = #tpu.pipeline_mode<synchronous>, transform_indices = @transform_1, window_bounds = array<i64: 64, 128>}, {pipeline_mode = #tpu.pipeline_mode<synchronous>, transform_indices = @transform_2, window_bounds = array<i64: 1, 128>}, {transform_indices = @transform_3, window_bounds = array<i64: 1, 80, 128>}]} {
    %c0 = arith.constant 0 : index
    %c0_0 = arith.constant 0 : index
    %c0_1 = arith.constant 0 : index
    %0 = vector.load %arg2[%c0, %c0_0, %c0_1] : memref<1x80x64xbf16, #tpu.memory_space<vmem>>, vector<1x80x64xbf16>
    %1 = vector.shape_cast %0 : vector<1x80x64xbf16> to vector<80x64xbf16>
    %c0_2 = arith.constant 0 : index
    %c0_3 = arith.constant 0 : index
    %2 = vector.load %arg3[%c0_2, %c0_3] : memref<64x128xbf16, #tpu.memory_space<vmem>>, vector<64x128xbf16>
    %cst = arith.constant dense<0.000000e+00> : vector<80x128xf32>
    %3 = tpu.matmul %1, %2, %cst {dimension_numbers = #tpu.dot_dimension_numbers<[1], [0], [0], [1], [0, 0, 1, 1], [], []>} : vector<80x64xbf16>, vector<64x128xbf16>, vector<80x128xf32> -> vector<80x128xf32>
    %c0_4 = arith.constant 0 : index
    %c0_5 = arith.constant 0 : index
    %4 = vector.load %arg4[%c0_4, %c0_5] : memref<1x128xf32, #tpu.memory_space<vmem>>, vector<1x128xf32>
    %5 = vector.broadcast %4 : vector<1x128xf32> to vector<80x128xf32>
    %6 = arith.addf %3, %5 : vector<80x128xf32>
    %c0_6 = arith.constant 0 : index
    %c0_7 = arith.constant 0 : index
    %c0_8 = arith.constant 0 : index
    %7 = vector.load %arg5[%c0_6, %c0_7, %c0_8] : memref<1x80x128xf32, #tpu.memory_space<vmem>>, vector<1x80x128xf32>
    %8 = vector.shape_cast %7 : vector<1x80x128xf32> to vector<80x128xf32>
    %9 = vector.shape_cast %6 : vector<80x128xf32> to vector<1x80x128xf32>
    tpu.vector_store %arg5[%c0_6, %c0_7, %c0_8], %9 {strides = array<i32>} : memref<1x80x128xf32, #tpu.memory_space<vmem>>, vector<1x80x128xf32>,
    return
  }
  func.func @transform_0(%arg0: i32, %arg1: i32) -> (i32, i32, i32) {
    %c0_i32 = arith.constant 0 : i32
    %c0_i32_0 = arith.constant 0 : i32
    return %arg0, %arg1, %c0_i32 : i32, i32, i32
  }
  func.func @transform_1(%arg0: i32, %arg1: i32) -> (i32, i32) {
    %c0_i32 = arith.constant 0 : i32
    %c0_i32_0 = arith.constant 0 : i32
    %c0_i32_1 = arith.constant 0 : i32
    return %c0_i32, %c0_i32_0 : i32, i32
  }
  func.func @transform_2(%arg0: i32, %arg1: i32) -> (i32, i32) {
    %c0_i32 = arith.constant 0 : i32
    %c0_i32_0 = arith.constant 0 : i32
    %c0_i32_1 = arith.constant 0 : i32
    return %c0_i32, %c0_i32_0 : i32, i32
  }
  func.func @transform_3(%arg0: i32, %arg1: i32) -> (i32, i32, i32) {
    %c0_i32 = arith.constant 0 : i32
    %c0_i32_0 = arith.constant 0 : i32
    return %arg0, %arg1, %c0_i32 : i32, i32, i32
  }
}

</mosaic_0001>

<bundles_post_ra>
// kernel: tpu_custom_call.1
= control target key start
LH: loop header
LB: loop body
LE: loop exit
PB: predicated region body
PF: predicated region fallthrough
CT: control target
= control target key end

     0   :  { %8 = vsyncpa [#allocation3], 0  ;;  %s855_s0 = inlined_call_operand.vmem [shape: bf16[2,160,64], index: 0, kind: input, shape index: {}]   ;;  %s856_s1 = inlined_call_operand.vmem [shape: bf16[64,128], index: 1, kind: input, shape index: {}]   ;;  %s857_s2 = inlined_call_operand.vmem [shape: f32[1,128], index: 2, kind: input, shape index: {}]   ;;  %s858_s3 = inlined_call_operand.hbm [shape: f32[2,160,128], index: 3, kind: output, shape index: {}]  }
   0x1   :  { %10 = vsyncpa [#allocation3 + $0x1], 0  ;;  %s698_s12 = smov 0   ;;  %s700_s13 = smov 0  }
   0x2   :  { %s702_s14 = smov 0   ;;  %s704_s15 = smov 0  }
   0x3   :  { %s706_s16 = smov 0   ;;  %s708_s17 = smov 0  }
   0x4   :  { %s710_s18 = smov 0   ;;  %s712_s19 = smov 0  }
   0x5 LB: > { %s432_s20 = sadd.s32 4294967295, %s674_s19   ;;  %s433_s21 = sadd.s32 4294967294, %s674_s19   ;;  %s674_s19 = sphi %s712_s19, %s16_s19   ;;  %s670_s18 = sphi %s710_s18, %s867_s18   ;;  %s666_s17 = sphi %s708_s17, %s866_s17   ;;  %s662_s16 = sphi %s706_s16, %s865_s16   ;;  %s658_s15 = sphi %s704_s15, %s864_s15   ;;  %s654_s14 = sphi %s702_s14, %s863_s14   ;;  %s650_s13 = sphi %s700_s13, %s862_s13   ;;  %s646_s12 = sphi %s698_s12, %s861_s12  }
   0x6   : > { %s25_s22 = sadd.s32 1, %s666_s17  ;;  %s28_s23 = sadd.s32 1, %s670_s18 }
   0x7   : > { %p26_p0 = scmp.ge.s32.totalorder %s25_s22, 2  ;;  %p117_p1 = scmp.ne.s32.totalorder %s654_s14, %s650_s13 }
   0x8   : > { %p118_p2 = scmp.eq.s32.totalorder %s432_s20, 3  ;;  %p123_p5 = scmp.ne.s32.totalorder %s650_s13, %s646_s12 }
   0x9   : > { %s869_s22 = smov (%p26_p0, %s25_s22), 0  ;;  %s871_s23 = smov (!%p26_p0, %s28_s23), %s670_s18 }
   0xa   : > { %s103_s24 = ssub.s32 %s666_s17, %s869_s22  ;;  %p749_p3 = por %p118_p2, %p117_p1 }
   0xb   : > { %p30_p4 = scmp.ge.s32.totalorder %s871_s23, 2  ;;  %p124_p6 = scmp.eq.s32.totalorder %s433_s21, 3 }
   0xc   : > { %p436_p7 = scmp.ge.s32.totalorder %s674_s19, 1  ;;  %p161_p9 = scmp.lt.s32.totalorder %s674_s19, 5 }
   0xd   : > { %s873_s23 = smov (%p30_p4, %s871_s23), 0  ;;  %p758_p8 = por %p124_p6, %p123_p5 }
   0xe   : > { %s102_s27 = ssub.s32 %s670_s18, %s873_s23  ;;  %s107_s28 = sadd.s32 1, %s654_s14 }
   0xf   : > { %s104_s29 = sor.u32 %s103_s24, %s102_s27  ;;  %p162_p10 = pnand %p436_p7, %p161_p9 }
  0x10   : > { %p105_p11 = scmp.eq.s32.totalorder %s104_s29, 0  ;;  %s773_s6 = smul.u32 (!%p162_p10), 10, %s658_s15 }
  0x11   : > { %165 = sbr.rel (%p162_p10) target bundleno = 200 (0xc8), region = 32  ;;  %p190_p12 = scmp.lt.s32.totalorder (!%p162_p10), %s662_s16, 1 }
  0x12   : > { %s767_s30 = scalar_select %p105_p11, %s654_s14, %s107_s28  }
  0x13   : > { %p192_p13 = scmp.lt.s32.totalorder (!%p162_p10), %s773_s6, 19  ;;  %s186_s7 = sand.u32 (!%p162_p10), 1, %s650_s13  }
  0x14   : > { %s503_s8 = smul.u32 (!%p162_p10), 80, %s186_s7 }
  0x15   : > { %s505_s20 = smul.u32 (!%p162_p10), 20, %s662_s16 }
  0x16   : > { %v490_v0 = vld [vmem:[%s856_s1 + $0x18] sm:$0xff]  ;;  %v489_v1 = vld [vmem:[%s856_s1 + $0x10] sm:$0xff]  ;;  %s191_s9 = scalar_select %p190_p12, %s662_s16, 1  ;;  %v488_v2 = vld [vmem:[%s856_s1 + $0x8] sm:$0xff]  ;;  %vm272_vm0 = vcmask 523264  }
  0x17   : > { %493 = vmatpush.bf16.msra.mxu3 %v490_v0  ;;  %492 = vmatpush.bf16.msra.mxu2 %v490_v0  ;;  %s193_s11 = scalar_select %p192_p13, %s773_s6, 19  ;;  %v487_v3 = vld [vmem:[%s856_s1] sm:$0xff] }
  0x18   : > { %292 = vmatpush.bf16.msra.mxu0 %v490_v0  ;;  %491 = vmatpush.bf16.msra.mxu1 %v490_v0  ;;  %s504_s10 = smul.u32 20, %s191_s9  ;;  %v579_v9 = vld [vmem:[%s857_s2] ss:$0 sm:$0xff]  ;;  %s344_s21 = sadd.s32 %s505_s20, %s773_s6 }
  0x19   : > { %s333_s6 = scalar_lea.sflag [#allocation3], %s186_s7 }
  0x1a   : > { %s195_s15 = sadd.s32 %s504_s10, %s193_s11  ;;  %s797_s11 = scalar_lea.vmem [#allocation2], %s503_s8 }
  0x1b   : > { %496 = vmatpush.bf16.msra.mxu3 %v489_v1  ;;  %495 = vmatpush.bf16.msra.mxu2 %v489_v1  ;;  %s437_s24 = sshll.u32 %s195_s15, 2  ;;  %s479_s15 = sshll.u32 %s344_s21, 3 }
  0x1c   : > { %293 = vmatpush.bf16.msra.mxu0 %v489_v1  ;;  %494 = vmatpush.bf16.msra.mxu1 %v489_v1  ;;  %s197_s5 = scalar_lea.vmem %s855_s0, %s437_s24  ;;  %s346_s28 = scalar_lea.hbm %s858_s3, %s479_s15 }
  0x1d   : > { %v485_v4 = vld [vmem:[%s197_s5 + $0x18] sm:$0xff]  ;;  %v484_v5 = vld [vmem:[%s197_s5 + $0x10] sm:$0xff]  ;;  %v482_v6 = vld [vmem:[%s197_s5] sm:$0xff]  ;;  %s349_s16 = sshll.u32 %s346_s28, 4  ;;  %s347_s29 = sshll.u32 %s797_s11, 4  ;;  %s350_s16 = int_to_ptr.hbm [resolvable:$true] %s349_s16  ;;  %s348_s29 = int_to_ptr.vmem [resolvable:$true] %s347_s29 }
  0x1e   : > { %v483_v7 = vld [vmem:[%s197_s5 + $0x8] sm:$0xff]  ;;  %v486_v8 = vld [vmem:[%s197_s5 + $0x20] sm:$0xff]  ;;  %s594_s4 = sshra.s32 %s350_s16, 4  ;;  %s600_s10 = scalar_lea.hbm %s858_s3, 320  ;;  %s595_s4 = int_to_ptr.hbm [resolvable:$true] %s594_s4 }
  0x1f   : > { %499 = vmatpush.bf16.msra.mxu3 %v488_v2  ;;  %498 = vmatpush.bf16.msra.mxu2 %v488_v2  ;;  %s596_s5 = scalar_lea.hbm %s595_s4, 80  ;;  %p601_p4 = scmp.lt.s32.totalorder %s595_s4, %s858_s3 }
  0x20   : > { %294 = vmatpush.bf16.msra.mxu0 %v488_v2  ;;  %497 = vmatpush.bf16.msra.mxu1 %v488_v2  ;;  %p597_p0 = scmp.ne.s32.totalorder %s595_s4, %s596_s5  ;;  %p602_p5 = scmp.lt.s32.totalorder %s600_s10, %s596_s5 }
  0x22   : > { %p598_p1 = pnand %p597_p0, %p749_p3  ;;  %p603_p6 = por %p602_p5, %p601_p4 }
  0x23   : > { %502 = vmatpush.bf16.msra.mxu3 %v487_v3  ;;  %501 = vmatpush.bf16.msra.mxu2 %v487_v3 }
  0x24   : > { %295 = vmatpush.bf16.msra.mxu0 %v487_v3  ;;  %500 = vmatpush.bf16.msra.mxu1 %v487_v3  ;;  %p599_p2 = pneg %p598_p1 }
  0x26   : > { %477 = vmatmul.msk.bf16.vlgmr.msra.gmra.mxu3 %vm272_vm0, %v485_v4  ;;  %476 = vmatmul.msk.bf16.vlgmr.msra.gmra.mxu2 %vm272_vm0, %v484_v5  ;;  %p604_p7 = pnand %p603_p6, %p599_p2 }
  0x27   : > { %474 = vmatmul.msk.bf16.vlgmr.msra.gmra.mxu0 %vm272_vm0, %v482_v6  ;;  %475 = vmatmul.msk.bf16.vlgmr.msra.gmra.mxu1 %vm272_vm0, %v483_v7 }
  0x36   : > { %478 = vmatmul.msk.bf16.gmra.mxu3 %vm272_vm0, %v486_v8 }
  0xa4   : > { %v297_v10 = vpop.f32.mrf.mxu0  ;;  %v302_v11 = vpop.f32.mrf.mxu1 }
  0xa5   : > { %v298_v12 = vadd.f32 %v579_v9, %v297_v10  ;;  %v303_v13 = vadd.f32 %v579_v9, %v302_v11 }
  0xa7   : > { %322 = vst [vmem:[%s797_s11] sm:$0xff] %v298_v12 }
  0xa8   : > { %324 = vst [vmem:[%s797_s11 + $0x10] sm:$0xff] %v303_v13 }
  0xa9   : > { %v312_v14 = vpop.f32.mrf.mxu3  ;;  %v307_v15 = vpop.f32.mrf.mxu2 }
  0xaa   : > { %v313_v16 = vadd.f32 %v579_v9, %v312_v14  ;;  %v308_v17 = vadd.f32 %v579_v9, %v307_v15 }
  0xac   : > { %328 = vst [vmem:[%s797_s11 + $0x30] sm:$0xff] %v313_v16  ;;  %v299_v18 = vpop.f32.mrf.mxu0  ;;  %v304_v19 = vpop.f32.mrf.mxu1 }
  0xad   : > { %326 = vst [vmem:[%s797_s11 + $0x20] sm:$0xff] %v308_v17  ;;  %v300_v20 = vadd.f32 %v579_v9, %v299_v18  ;;  %v305_v21 = vadd.f32 %v579_v9, %v304_v19 }
  0xaf   : > { %323 = vst [vmem:[%s797_s11 + $0x8] sm:$0xff] %v300_v20 }
  0xb0   : > { %325 = vst [vmem:[%s797_s11 + $0x18] sm:$0xff] %v305_v21 }
  0xb1   : > { %v314_v22 = vpop.f32.mrf.mxu3  ;;  %v309_v23 = vpop.f32.mrf.mxu2 }
  0xb2   : > { %v315_v24 = vadd.f32 %v579_v9, %v314_v22  ;;  %v310_v25 = vadd.f32 %v579_v9, %v309_v23 }
  0xb4   : > { %329 = vst [vmem:[%s797_s11 + $0x38] sm:$0xff] %v315_v24 }
  0xb5   : > { %327 = vst [vmem:[%s797_s11 + $0x28] sm:$0xff] %v310_v25 }
  0xb9   : > { %v317_v26 = vpop.f32.mrf.mxu3 }
  0xba   : > { %v318_v27 = vadd.f32 %v579_v9, %v317_v26 }
  0xbc   : > { %330 = vst [vmem:[%s797_s11 + $0x40] sm:$0xff] %v318_v27 }
  0xc1   : > { %v319_v28 = vpop.f32.mrf.mxu3 }
  0xc2   : > { %v320_v29 = vadd.f32 %v579_v9, %v319_v28 }
  0xc4   : > { %331 = vst [vmem:[%s797_s11 + $0x48] sm:$0xff] %v320_v29 }
  0xc5   : > { %607 = shalt.err (!%p604_p7)
}
  0xc6   : > { %s676_s7 = smov 128   ;;  %s677_s11 = smov 8  }
  0xc7   : > { %506 = dma.vmem_to_hbm [thread:$0]  (%p749_p3), %s348_s29, 1280, %s350_s16, %s333_s6, %s676_s7, %s676_s7, %s677_s11  }
  0xc8 PF: > { %p512_p9 = scmp.ge.s32.totalorder %s674_s19, 2  ;;  %s364_s15 = sand.u32 1, %s646_s12  }
  0xc9   : > { %s365_s24 = scalar_lea.sflag [#allocation3], %s364_s15 }
  0xca   : > { %p509_p10 = pnand %p512_p9, %p758_p8 }
  0xcc   : > { %p510_p11 = pneg %p509_p10 }
  0xce   : > { %641 = dma.done.wait (%p510_p11), %s365_s24, 1280  }
  0xcf   : > { %643 = vsyncadd (%p510_p11), %s365_s24, 4294966016  ;;  %s16_s19 = sadd.s32 1, %s674_s19   ;;  %s861_s12 = smov %s650_s13 }
  0xd0   : > { %p13_p12 = scmp.ge.s32.totalorder %s16_s19, 6   ;;  %s862_s13 = smov %s654_s14 }
  0xd1   : > { %s863_s14 = smov %s767_s30  ;;  %s864_s15 = smov %s666_s17 }
  0xd2   : > { %s865_s16 = smov %s670_s18  ;;  %s866_s17 = smov %s869_s22 }
  0xd3   : > { %s867_s18 = smov %s873_s23  ;;  %15 = sbr.rel (!%p13_p12) target bundleno = 5 (0x5), region = 67 }
  0xd8   :  { %371 = vsyncpa [#allocation3], 1 }
  0xd9   :  { %373 = vsyncpa [#allocation3 + $0x1], 1 }

</bundles_post_ra>
